<compile_context>
chip_gen: v7x
topology: tpu7x:2x2x1
jax: 0.10.0
libtpu: 0.0.40
codegen_flags: <defaults>
</compile_context>

<pallas_src>
import jax
import jax.numpy as jnp
from jax.experimental import pallas as pl
from jax.experimental.pallas import tpu as pltpu


def _round_up(x, m):
    return ((x + m - 1) // m) * m


def _cdiv(a, b):
    return (a + b - 1) // b


# ----------------------------------------------------------------------------
# Kernel.  Ref order:
#   x_w[TB,W] f32, x_d[TB,n_emb] i32, tables_t[D_pad,V_total] f32,
#   (w[out,in] bf16, b[out,1] f32) * n_hidden,
#   fc_w_wide8[8,W] f32, fc_w_deep[H_last,1] f32, fc_b[1,1] f32,
#   out[1,TB] f32
# ----------------------------------------------------------------------------
def make_wide_deep_kernel(n_hidden, n_emb, vocab_offsets, v_total):
    nt_dims = (((1,), (1,)), ((), ()))   # contract last dims of both operands

    def kernel(*refs):
        x_w_ref, x_d_ref, tables_ref = refs[0], refs[1], refs[2]
        hidden = refs[3:3 + 2 * n_hidden]
        fcw_wide8_ref, fcw_deep_ref, fcb_ref, out_ref = refs[3 + 2 * n_hidden:]

        tb = x_w_ref.shape[0]

        # ---- fused embedding gather + concat ------------------------------
        # One-hot (TB, V_total) built on the VPU (ranges per table are
        # disjoint, so a logical OR of per-column equality masks suffices),
        # then one MXU contraction against the block-diagonal transposed table
        # stack gives the deep input already in [feature, batch] layout.
        lane_iota = jax.lax.broadcasted_iota(jnp.int32, (tb, v_total), 1)
        onehot = None
        for e in range(n_emb):
            idx_col = x_d_ref[:, e:e + 1] + vocab_offsets[e]      # (TB, 1) i32
            eq = lane_iota == idx_col                             # (TB, V)
            onehot = eq if onehot is None else jnp.logical_or(onehot, eq)
        onehot = onehot.astype(jnp.float32)

        # (D_pad, V) . (TB, V)^T -> (D_pad, TB)
        deep = jax.lax.dot_general(
            tables_ref[...], onehot, dimension_numbers=nt_dims,
            preferred_element_type=jnp.float32)

        # ---- deep MLP in [feature, batch] layout ---------------------------
        # bf16 into the MXU, f32 accumulation; bias/relu in f32 (v5e-safe).
        h = deep.astype(jnp.bfloat16)
        for li in range(n_hidden):
            w_ref, b_ref = hidden[2 * li], hidden[2 * li + 1]
            z = jnp.dot(w_ref[...], h, preferred_element_type=jnp.float32)
            z = jnp.maximum(z + b_ref[...], 0.0)                  # (out, TB) f32
            h = z.astype(jnp.bfloat16) if li < n_hidden - 1 else z

        # ---- head: fc(concat([X_w, deep])) = X_w.w_wide + deep.w_deep + b --
        # Wide half on the MXU: (8, W) . (TB, W)^T -> (8, TB); row 0 holds the
        # real fc weight (8 rows avoid an M=1 matmul, MXU pads to 8 anyway).
        wide8 = jax.lax.dot_general(
            fcw_wide8_ref[...], x_w_ref[...], dimension_numbers=nt_dims,
            preferred_element_type=jnp.float32)                   # (8, TB) f32
        # Deep half on the VPU/XLU: multiply + sublane reduce -> (1, TB).
        deep_head = jnp.sum(h * fcw_deep_ref[...], axis=0, keepdims=True)
        out_ref[...] = wide8[0:1, :] + deep_head + fcb_ref[...]   # lane-dense

    return kernel


# ----------------------------------------------------------------------------
# Parameters: natural (PyTorch-like) layout + one-time kernel repack.
# ----------------------------------------------------------------------------
def init_params(key, wide_dim, embedding_inputs, hidden_layers):
    """Deterministic synthetic parameters matching the PyTorch module's shapes."""
    p = {"emb_tables": [], "hidden_w": [], "hidden_b": [], "wide_dim": wide_dim}
    deep_dim = 0
    for spec in embedding_inputs:
        _, vocab, edim = spec.split("SEP")
        vocab, edim = int(vocab), int(edim)
        key, sub = jax.random.split(key)
        p["emb_tables"].append(
            jax.random.normal(sub, (vocab, edim), jnp.float32) * 0.1)
        deep_dim += edim

    dims = [deep_dim] + list(hidden_layers)
    for i in range(len(hidden_layers)):
        key, kw, kb = jax.random.split(key, 3)
        w = (jax.random.normal(kw, (dims[i + 1], dims[i]), jnp.float32) * 0.1)
        p["hidden_w"].append(w.astype(jnp.bfloat16))
        p["hidden_b"].append(jax.random.normal(kb, (dims[i + 1],), jnp.float32) * 0.1)

    key, kw, kb = jax.random.split(key, 3)
    p["fc_w"] = jax.random.normal(
        kw, (wide_dim + hidden_layers[-1],), jnp.float32) * 0.1
    p["fc_b"] = jax.random.normal(kb, (), jnp.float32) * 0.1
    return p


def pack_params(p):
    """One-time repack into the kernel-friendly layout (hoisted out of forward)."""
    wide_dim = p["wide_dim"]
    embed_dims = [t.shape[1] for t in p["emb_tables"]]
    vocabs = [t.shape[0] for t in p["emb_tables"]]
    deep_dim, v_total = sum(embed_dims), sum(vocabs)
    d_pad = _round_up(deep_dim, 16)            # bf16 sublane packing for layer-1 K

    tables_t = jnp.zeros((d_pad, v_total), jnp.float32)
    v_offsets, d_off, v_off = [], 0, 0
    for t in p["emb_tables"]:
        v, e = t.shape
        tables_t = tables_t.at[d_off:d_off + e, v_off:v_off + v].set(t.T)
        v_offsets.append(v_off)
        d_off += e
        v_off += v

    hidden_w = list(p["hidden_w"])
    if hidden_w[0].shape[1] != d_pad:          # pad layer-1 K to match D_pad
        hidden_w[0] = jnp.pad(
            hidden_w[0], ((0, 0), (0, d_pad - hidden_w[0].shape[1])))
    hidden_b = [b.reshape(-1, 1).astype(jnp.float32) for b in p["hidden_b"]]

    fc_w = p["fc_w"]
    fc_w_wide8 = jnp.zeros((8, wide_dim), jnp.float32).at[0].set(fc_w[:wide_dim])
    fc_w_deep = fc_w[wide_dim:].reshape(-1, 1)
    fc_b = p["fc_b"].reshape(1, 1)

    return {"tables_t": tables_t, "v_offsets": tuple(v_offsets),
            "n_emb": len(vocabs), "v_total": v_total,
            "hidden_w": hidden_w, "hidden_b": hidden_b,
            "fc_w_wide8": fc_w_wide8, "fc_w_deep": fc_w_deep, "fc_b": fc_b,
            "wide_dim": wide_dim}


# ----------------------------------------------------------------------------
# Forward wrapper.
# ----------------------------------------------------------------------------
def _blk_bytes(shape, itemsize):
    r, c = (1, shape[0]) if len(shape) == 1 else (shape[-2], shape[-1])
    return _round_up(r, 8) * _round_up(c, 128) * itemsize


def wide_and_deep_forward(X_w, X_d, kp, *, max_batch_tile=4096):
    B, wide_dim = X_w.shape
    n_emb, v_total = kp["n_emb"], kp["v_total"]
    n_hidden = len(kp["hidden_w"])
    h_last = kp["hidden_w"][-1].shape[0]
    d_pad = kp["tables_t"].shape[0]

    X_w = X_w.astype(jnp.float32)              # wide half stays exact f32
    X_d = X_d.astype(jnp.int32)

    # ---- batch tile: lane-dense, as large as sensible, but >= 2 grid steps
    # when the batch allows (v7x megacore; harmless on v5e/v6e).
    b128 = _round_up(max(B, 1), 128)
    n_steps = max(1, _cdiv(b128, max_batch_tile))
    if n_steps == 1 and b128 > 128:
        n_steps = 2
    TB = _round_up(_cdiv(b128, n_steps), 128)
    B_pad = TB * _cdiv(B, TB)
    if B_pad != B:
        X_w = jnp.pad(X_w, ((0, B_pad - B), (0, 0)))
        X_d = jnp.pad(X_d, ((0, B_pad - B), (0, 0)))
    grid = (B_pad // TB,)

    kernel_inputs = [X_w, X_d, kp["tables_t"]]
    in_specs = [
        pl.BlockSpec((TB, wide_dim), lambda i: (i, 0)),           # batch-tiled
        pl.BlockSpec((TB, n_emb), lambda i: (i, 0)),              # batch-tiled
        pl.BlockSpec(kp["tables_t"].shape, lambda i: (0, 0)),     # VMEM-resident
    ]
    for w, b in zip(kp["hidden_w"], kp["hidden_b"]):
        kernel_inputs += [w, b]
        in_specs += [pl.BlockSpec(w.shape, lambda i: (0, 0)),
                     pl.BlockSpec(b.shape, lambda i: (0, 0))]
    kernel_inputs += [kp["fc_w_wide8"], kp["fc_w_deep"], kp["fc_b"]]
    in_specs += [pl.BlockSpec(kp["fc_w_wide8"].shape, lambda i: (0, 0)),
                 pl.BlockSpec(kp["fc_w_deep"].shape, lambda i: (0, 0)),
                 pl.BlockSpec(kp["fc_b"].shape, lambda i: (0, 0))]

    # ---- VMEM budget from actual padded block sizes (32 MiB floor also covers
    # v5e, whose default scoped VMEM is only 16 MiB).
    vmem_est = (2 * _blk_bytes((TB, wide_dim), 4)
                + 2 * _blk_bytes((TB, n_emb), 4)
                + 2 * _blk_bytes((1, TB), 4)
                + 2 * sum(_blk_bytes(a.shape, a.dtype.itemsize)
                          for a in kernel_inputs[2:])
                + _blk_bytes((TB, v_total), 4)                    # one-hot
                + 3 * _blk_bytes((max(w.shape[0] for w in kp["hidden_w"]), TB), 4))
    vmem_limit = max(32 * 1024 * 1024, int(1.25 * vmem_est))

    # ---- advisory cost estimate (weights counted once; resident across steps)
    flops = 2 * d_pad * v_total * B_pad
    for w in kp["hidden_w"]:
        flops += 2 * w.shape[0] * w.shape[1] * B_pad
    flops += 2 * (8 * wide_dim + h_last) * B_pad
    bytes_accessed = (X_w.size * 4 + X_d.size * 4 + B_pad * 4
                      + kp["tables_t"].size * 4
                      + sum(w.size * 2 for w in kp["hidden_w"])
                      + sum(b.size * 4 for b in kp["hidden_b"])
                      + kp["fc_w_wide8"].size * 4 + kp["fc_w_deep"].size * 4 + 4)

    out_t = pl.pallas_call(
        make_wide_deep_kernel(n_hidden, n_emb, kp["v_offsets"], v_total),
        out_shape=jax.ShapeDtypeStruct((1, B_pad), jnp.float32),
        grid=grid,
        in_specs=in_specs,
        out_specs=pl.BlockSpec((1, TB), lambda i: (0, i)),        # lane-dense slab
        compiler_params=pltpu.CompilerParams(
            dimension_semantics=("parallel",),
            vmem_limit_bytes=vmem_limit,
        ),
        cost_estimate=pl.CostEstimate(
            flops=int(flops), transcendentals=0,
            bytes_accessed=int(bytes_accessed)),
    )(*kernel_inputs)

    return out_t[0, :B][:, None]                                  # back to (B, 1)


# ----------------------------------------------------------------------------
# Pure-JAX f32 reference (mirrors the PyTorch forward in eval mode).
# ----------------------------------------------------------------------------
def reference_forward(X_w, X_d, p):
    embs = [jnp.take(t, X_d[:, i].astype(jnp.int32), axis=0)
            for i, t in enumerate(p["emb_tables"])]
    deep = jnp.concatenate(embs, axis=-1)
    for w, b in zip(p["hidden_w"], p["hidden_b"]):
        deep = jnp.maximum(deep @ w.astype(jnp.float32).T + b, 0.0)
    fc_in = jnp.concatenate([X_w.astype(jnp.float32), deep], axis=-1)
    return fc_in @ p["fc_w"][:, None] + p["fc_b"]


if __name__ == "__main__":
    # Small, module-consistent configuration.
    wide_dim = 16
    embedding_inputs = ["userSEP10SEP8", "itemSEP12SEP8", "catSEP6SEP8"]
    hidden_layers = [32, 16]
    batch = 8

    root = jax.random.PRNGKey(0)
    k_params, k_xw, k_xd = jax.random.split(root, 3)

    params = init_params(k_params, wide_dim, embedding_inputs, hidden_layers)
    kparams = pack_params(params)

    X_w = jax.random.normal(k_xw, (batch, wide_dim), jnp.float32)
    vocabs = [int(e.split("SEP")[1]) for e in embedding_inputs]
    cols = []
    for v in vocabs:
        k_xd, sub = jax.random.split(k_xd)
        cols.append(jax.random.randint(sub, (batch,), 0, v, dtype=jnp.int32))
    X_d = jnp.stack(cols, axis=1)

    out = wide_and_deep_forward(X_w, X_d, kparams)
    jax.block_until_ready(out)

    ref = reference_forward(X_w, X_d, params)
    assert out.shape == (batch, 1), out.shape
    max_diff = float(jnp.max(jnp.abs(out - ref)))
    # bf16 hidden weights / inter-layer activations with f32 accumulation.
    assert jnp.allclose(out, ref, atol=2e-2, rtol=2e-2), f"max abs diff={max_diff}"

    print("KERNEL_OK")
</pallas_src>

<mosaic_0001>
module attributes {stable_mosaic.version = 11 : i64} {
  func.func @kernel(%arg0: i32, %arg1: memref<128x16xf32, #tpu.memory_space<vmem>>, %arg2: memref<128x3xi32, #tpu.memory_space<vmem>>, %arg3: memref<32x28xf32, #tpu.memory_space<vmem>>, %arg4: memref<32x32xbf16, #tpu.memory_space<vmem>>, %arg5: memref<32x1xf32, #tpu.memory_space<vmem>>, %arg6: memref<16x32xbf16, #tpu.memory_space<vmem>>, %arg7: memref<16x1xf32, #tpu.memory_space<vmem>>, %arg8: memref<8x16xf32, #tpu.memory_space<vmem>>, %arg9: memref<16x1xf32, #tpu.memory_space<vmem>>, %arg10: memref<1x1xf32, #tpu.memory_space<vmem>>, %arg11: memref<1x128xf32, #tpu.memory_space<vmem>>) attributes {dimension_semantics = [#tpu.dimension_semantics<parallel>], iteration_bounds = array<i64: 1>, scalar_prefetch = 0 : i64, scratch_operands = 0 : i64, tpu.core_type = #tpu.core_type<tc>, window_params = [{transform_indices = @transform_0, window_bounds = array<i64: 128, 16>}, {transform_indices = @transform_1, window_bounds = array<i64: 128, 3>}, {pipeline_mode = #tpu.pipeline_mode<synchronous>, transform_indices = @transform_2, window_bounds = array<i64: 32, 28>}, {pipeline_mode = #tpu.pipeline_mode<synchronous>, transform_indices = @transform_3, window_bounds = array<i64: 32, 32>}, {pipeline_mode = #tpu.pipeline_mode<synchronous>, transform_indices = @transform_4, window_bounds = array<i64: 32, 1>}, {pipeline_mode = #tpu.pipeline_mode<synchronous>, transform_indices = @transform_5, window_bounds = array<i64: 16, 32>}, {pipeline_mode = #tpu.pipeline_mode<synchronous>, transform_indices = @transform_6, window_bounds = array<i64: 16, 1>}, {pipeline_mode = #tpu.pipeline_mode<synchronous>, transform_indices = @transform_7, window_bounds = array<i64: 8, 16>}, {pipeline_mode = #tpu.pipeline_mode<synchronous>, transform_indices = @transform_8, window_bounds = array<i64: 16, 1>}, {pipeline_mode = #tpu.pipeline_mode<synchronous>, transform_indices = @transform_9, window_bounds = array<i64: 1, 1>}, {transform_indices = @transform_10, window_bounds = array<i64: 1, 128>}]} {
    %0 = tpu.iota {dimensions = array<i32: 1>} : vector<128x28xi32>
    %c0 = arith.constant 0 : index
    %c0_0 = arith.constant 0 : index
    %1 = vector.load %arg2[%c0, %c0_0] : memref<128x3xi32, #tpu.memory_space<vmem>>, vector<128x1xi32>
    %c0_i32 = arith.constant 0 : i32
    %2 = vector.broadcast %c0_i32 : i32 to vector<128x1xi32>
    %3 = arith.addi %1, %2 : vector<128x1xi32>
    %4 = vector.broadcast %3 : vector<128x1xi32> to vector<128x28xi32>
    %5 = arith.cmpi eq, %0, %4 : vector<128x28xi32>
    %c0_1 = arith.constant 0 : index
    %c1 = arith.constant 1 : index
    %6 = vector.load %arg2[%c0_1, %c1] : memref<128x3xi32, #tpu.memory_space<vmem>>, vector<128x1xi32>
    %c10_i32 = arith.constant 10 : i32
    %7 = vector.broadcast %c10_i32 : i32 to vector<128x1xi32>
    %8 = arith.addi %6, %7 : vector<128x1xi32>
    %9 = vector.broadcast %8 : vector<128x1xi32> to vector<128x28xi32>
    %10 = arith.cmpi eq, %0, %9 : vector<128x28xi32>
    %11 = arith.ori %5, %10 : vector<128x28xi1>
    %c0_2 = arith.constant 0 : index
    %c2 = arith.constant 2 : index
    %12 = vector.load %arg2[%c0_2, %c2] : memref<128x3xi32, #tpu.memory_space<vmem>>, vector<128x1xi32>
    %c22_i32 = arith.constant 22 : i32
    %13 = vector.broadcast %c22_i32 : i32 to vector<128x1xi32>
    %14 = arith.addi %12, %13 : vector<128x1xi32>
    %15 = vector.broadcast %14 : vector<128x1xi32> to vector<128x28xi32>
    %16 = arith.cmpi eq, %0, %15 : vector<128x28xi32>
    %17 = arith.ori %11, %16 : vector<128x28xi1>
    %18 = arith.extui %17 : vector<128x28xi1> to vector<128x28xi32>
    %19 = arith.sitofp %18 : vector<128x28xi32> to vector<128x28xf32>
    %c0_3 = arith.constant 0 : index
    %c0_4 = arith.constant 0 : index
    %20 = vector.load %arg3[%c0_3, %c0_4] : memref<32x28xf32, #tpu.memory_space<vmem>>, vector<32x28xf32>
    %cst = arith.constant dense<0.000000e+00> : vector<32x128xf32>
    %21 = tpu.matmul %20, %19, %cst {dimension_numbers = #tpu.dot_dimension_numbers<[1], [1], [0], [0], [0, 0, 1, 0], [], []>} : vector<32x28xf32>, vector<128x28xf32>, vector<32x128xf32> -> vector<32x128xf32>
    %22 = arith.truncf %21 : vector<32x128xf32> to vector<32x128xbf16>
    %c0_5 = arith.constant 0 : index
    %c0_6 = arith.constant 0 : index
    %23 = vector.load %arg4[%c0_5, %c0_6] : memref<32x32xbf16, #tpu.memory_space<vmem>>, vector<32x32xbf16>
    %cst_7 = arith.constant dense<0.000000e+00> : vector<32x128xf32>
    %24 = tpu.matmul %23, %22, %cst_7 {dimension_numbers = #tpu.dot_dimension_numbers<[1], [0], [0], [1], [0, 0, 1, 1], [], []>} : vector<32x32xbf16>, vector<32x128xbf16>, vector<32x128xf32> -> vector<32x128xf32>
    %c0_8 = arith.constant 0 : index
    %c0_9 = arith.constant 0 : index
    %25 = vector.load %arg5[%c0_8, %c0_9] : memref<32x1xf32, #tpu.memory_space<vmem>>, vector<32x1xf32>
    %26 = vector.broadcast %25 : vector<32x1xf32> to vector<32x128xf32>
    %27 = arith.addf %24, %26 : vector<32x128xf32>
    %cst_10 = arith.constant 0.000000e+00 : f32
    %28 = vector.broadcast %cst_10 : f32 to vector<32x128xf32>
    %29 = arith.maximumf %27, %28 : vector<32x128xf32>
    %30 = arith.truncf %29 : vector<32x128xf32> to vector<32x128xbf16>
    %c0_11 = arith.constant 0 : index
    %c0_12 = arith.constant 0 : index
    %31 = vector.load %arg6[%c0_11, %c0_12] : memref<16x32xbf16, #tpu.memory_space<vmem>>, vector<16x32xbf16>
    %cst_13 = arith.constant dense<0.000000e+00> : vector<16x128xf32>
    %32 = tpu.matmul %31, %30, %cst_13 {dimension_numbers = #tpu.dot_dimension_numbers<[1], [0], [0], [1], [0, 0, 1, 1], [], []>} : vector<16x32xbf16>, vector<32x128xbf16>, vector<16x128xf32> -> vector<16x128xf32>
    %c0_14 = arith.constant 0 : index
    %c0_15 = arith.constant 0 : index
    %33 = vector.load %arg7[%c0_14, %c0_15] : memref<16x1xf32, #tpu.memory_space<vmem>>, vector<16x1xf32>
    %34 = vector.broadcast %33 : vector<16x1xf32> to vector<16x128xf32>
    %35 = arith.addf %32, %34 : vector<16x128xf32>
    %cst_16 = arith.constant 0.000000e+00 : f32
    %36 = vector.broadcast %cst_16 : f32 to vector<16x128xf32>
    %37 = arith.maximumf %35, %36 : vector<16x128xf32>
    %c0_17 = arith.constant 0 : index
    %c0_18 = arith.constant 0 : index
    %38 = vector.load %arg8[%c0_17, %c0_18] : memref<8x16xf32, #tpu.memory_space<vmem>>, vector<8x16xf32>
    %c0_19 = arith.constant 0 : index
    %c0_20 = arith.constant 0 : index
    %39 = vector.load %arg1[%c0_19, %c0_20] : memref<128x16xf32, #tpu.memory_space<vmem>>, vector<128x16xf32>
    %cst_21 = arith.constant dense<0.000000e+00> : vector<8x128xf32>
    %40 = tpu.matmul %38, %39, %cst_21 {dimension_numbers = #tpu.dot_dimension_numbers<[1], [1], [0], [0], [0, 0, 1, 0], [], []>} : vector<8x16xf32>, vector<128x16xf32>, vector<8x128xf32> -> vector<8x128xf32>
    %c0_22 = arith.constant 0 : index
    %c0_23 = arith.constant 0 : index
    %41 = vector.load %arg9[%c0_22, %c0_23] : memref<16x1xf32, #tpu.memory_space<vmem>>, vector<16x1xf32>
    %42 = vector.broadcast %41 : vector<16x1xf32> to vector<16x128xf32>
    %43 = arith.mulf %37, %42 : vector<16x128xf32>
    %cst_24 = arith.constant dense<0.000000e+00> : vector<128xf32>
    %44 = vector.multi_reduction <add>, %43, %cst_24 [0] : vector<16x128xf32> to vector<128xf32>
    %45 = vector.shape_cast %44 : vector<128xf32> to vector<1x128xf32>
    %46 = vector.extract_strided_slice %40 {offsets = [0, 0], sizes = [1, 128], strides = [1, 1]} : vector<8x128xf32> to vector<1x128xf32>
    %47 = arith.addf %46, %45 : vector<1x128xf32>
    %c0_25 = arith.constant 0 : index
    %c0_26 = arith.constant 0 : index
    %48 = vector.load %arg10[%c0_25, %c0_26] : memref<1x1xf32, #tpu.memory_space<vmem>>, vector<1x1xf32>
    %49 = vector.broadcast %48 : vector<1x1xf32> to vector<1x128xf32>
    %50 = arith.addf %47, %49 : vector<1x128xf32>
    %c0_27 = arith.constant 0 : index
    %c0_28 = arith.constant 0 : index
    %51 = vector.load %arg11[%c0_27, %c0_28] : memref<1x128xf32, #tpu.memory_space<vmem>>, vector<1x128xf32>
    tpu.vector_store %arg11[%c0_27, %c0_28], %50 {strides = array<i32>} : memref<1x128xf32, #tpu.memory_space<vmem>>, vector<1x128xf32>,
    return
  }
  func.func @transform_0(%arg0: i32) -> (i32, i32) {
    %c0_i32 = arith.constant 0 : i32
    %c0_i32_0 = arith.constant 0 : i32
    return %arg0, %c0_i32 : i32, i32
  }
  func.func @transform_1(%arg0: i32) -> (i32, i32) {
    %c0_i32 = arith.constant 0 : i32
    %c0_i32_0 = arith.constant 0 : i32
    return %arg0, %c0_i32 : i32, i32
  }
  func.func @transform_2(%arg0: i32) -> (i32, i32) {
    %c0_i32 = arith.constant 0 : i32
    %c0_i32_0 = arith.constant 0 : i32
    %c0_i32_1 = arith.constant 0 : i32
    return %c0_i32, %c0_i32_0 : i32, i32
  }
  func.func @transform_3(%arg0: i32) -> (i32, i32) {
    %c0_i32 = arith.constant 0 : i32
    %c0_i32_0 = arith.constant 0 : i32
    %c0_i32_1 = arith.constant 0 : i32
    return %c0_i32, %c0_i32_0 : i32, i32
  }
  func.func @transform_4(%arg0: i32) -> (i32, i32) {
    %c0_i32 = arith.constant 0 : i32
    %c0_i32_0 = arith.constant 0 : i32
    %c0_i32_1 = arith.constant 0 : i32
    return %c0_i32, %c0_i32_0 : i32, i32
  }
  func.func @transform_5(%arg0: i32) -> (i32, i32) {
    %c0_i32 = arith.constant 0 : i32
    %c0_i32_0 = arith.constant 0 : i32
    %c0_i32_1 = arith.constant 0 : i32
    return %c0_i32, %c0_i32_0 : i32, i32
  }
  func.func @transform_6(%arg0: i32) -> (i32, i32) {
    %c0_i32 = arith.constant 0 : i32
    %c0_i32_0 = arith.constant 0 : i32
    %c0_i32_1 = arith.constant 0 : i32
    return %c0_i32, %c0_i32_0 : i32, i32
  }
  func.func @transform_7(%arg0: i32) -> (i32, i32) {
    %c0_i32 = arith.constant 0 : i32
    %c0_i32_0 = arith.constant 0 : i32
    %c0_i32_1 = arith.constant 0 : i32
    return %c0_i32, %c0_i32_0 : i32, i32
  }
  func.func @transform_8(%arg0: i32) -> (i32, i32) {
    %c0_i32 = arith.constant 0 : i32
    %c0_i32_0 = arith.constant 0 : i32
    %c0_i32_1 = arith.constant 0 : i32
    return %c0_i32, %c0_i32_0 : i32, i32
  }
  func.func @transform_9(%arg0: i32) -> (i32, i32) {
    %c0_i32 = arith.constant 0 : i32
    %c0_i32_0 = arith.constant 0 : i32
    %c0_i32_1 = arith.constant 0 : i32
    return %c0_i32, %c0_i32_0 : i32, i32
  }
  func.func @transform_10(%arg0: i32) -> (i32, i32) {
    %c0_i32 = arith.constant 0 : i32
    %c0_i32_0 = arith.constant 0 : i32
    return %c0_i32, %arg0 : i32, i32
  }
}

</mosaic_0001>

<bundles_post_ra>
// kernel: tpu_custom_call.1
= control target key start
LH: loop header
LB: loop body
LE: loop exit
PB: predicated region body
PF: predicated region fallthrough
CT: control target
= control target key end

     0   :  { %s1578_s0 = inlined_call_operand.vmem [shape: f32[128,16], index: 0, kind: input, shape index: {}]   ;;  %s1579_s1 = inlined_call_operand.vmem [shape: s32[128,3], index: 1, kind: input, shape index: {}]   ;;  %s1580_s2 = inlined_call_operand.vmem [shape: f32[32,28], index: 2, kind: input, shape index: {}]   ;;  %s1581_s3 = inlined_call_operand.vmem [shape: bf16[32,32], index: 3, kind: input, shape index: {}]   ;;  %s1582_s4 = inlined_call_operand.vmem [shape: f32[32,1], index: 4, kind: input, shape index: {}]   ;;  %s1583_s5 = inlined_call_operand.vmem [shape: bf16[16,32], index: 5, kind: input, shape index: {}]   ;;  %s1584_s6 = inlined_call_operand.vmem [shape: f32[16,1], index: 6, kind: input, shape index: {}]   ;;  %s1585_s7 = inlined_call_operand.vmem [shape: f32[8,16], index: 7, kind: input, shape index: {}]   ;;  %s1586_s8 = inlined_call_operand.vmem [shape: f32[16,1], index: 8, kind: input, shape index: {}]   ;;  %s1587_s9 = inlined_call_operand.<no memory space> [shape: f32[1,1], index: 9, kind: input, shape index: {}]   ;;  %s1588_s10 = inlined_call_operand.hbm [shape: f32[1,128], index: 10, kind: output, shape index: {}]  }
   0x1   :  { %v15_v0 = vstv %s1587_s9 }
   0x2   :  { %16 = vst [vmem:[#allocation2] sm:$0x1] %v15_v0 }
   0x3   :  { %v41_v1 = vld [vmem:[%s1579_s1] sm:$0xff]  ;;  %v43_v2 = vld [vmem:[%s1579_s1 + $0x10] sm:$0xff]  ;;  %v42_v3 = vld [vmem:[%s1579_s1 + $0x8] sm:$0xff]  ;;  %v1185_v4 = vmov 2   ;;  %v1186_v5 = vmov 1  }
   0x4   :  { %1129 = vset.pattern.permute.xlu0 %v1185_v4  ;;  %1128 = vset.pattern.permute.xlu1 %v1186_v5  ;;  %v217_v6 = vadd.s32 22, %v41_v1  ;;  %v121_v7 = vadd.s32 10, %v41_v1  ;;  %v219_v8 = vadd.s32 22, %v43_v2  ;;  %v122_v9 = vadd.s32 10, %v42_v3  ;;  %v45_v10 = vld [vmem:[%s1579_s1 + $0x20] sm:$0xff] }
   0x5   :  { %v221_v11 = vadd.s32 22, %v45_v10  ;;  %v218_v12 = vadd.s32 22, %v42_v3 }
   0x6   :  { %234 = vperm.xlu0 %1129, %v217_v6   ;;  %138 = vperm.xlu1 %1128, %v121_v7  }
   0xa   :  { %240 = vperm.xlu0 %1129, %v219_v8   ;;  %141 = vperm.xlu1 %1128, %v122_v9  }
   0xe   :  { %246 = vperm.xlu0 %1129, %v221_v11   ;;  %1130 = vset.pattern.permute.xlu1 %v1185_v4 }
   0xf   :  { %17 = vsyncpa [#allocation4], 0  ;;  %237 = vperm.xlu1 %1130, %v218_v12   ;;  %v1187_v13 = vmov 0   ;;  %v123_v14 = vadd.s32 10, %v43_v2  ;;  %v44_v15 = vld [vmem:[%s1579_s1 + $0x18] sm:$0xff]  ;;  %v1188_v16 = vmov 0.0   ;;  %v39_v55 = vlaneseq }
  0x10   :  { %998 = vmatprep.subr.bf16.mxu1 %v1188_v16  ;;  %v124_v17 = vadd.s32 10, %v44_v15  ;;  %v46_v18 = vld [vmem:[%s1579_s1 + $0x28] sm:$0xff]  ;;  %v220_v19 = vadd.s32 22, %v44_v15  ;;  %v48_v20 = vld [vmem:[%s1579_s1 + $0x38] sm:$0xff]  ;;  %v125_v22 = vadd.s32 10, %v45_v10  ;;  %v47_v24 = vld [vmem:[%s1579_s1 + $0x30] sm:$0xff] }
  0x11   :  { %v50_v21 = vld [vmem:[%s1579_s1 + $0x48] sm:$0xff]  ;;  %v52_v23 = vld [vmem:[%s1579_s1 + $0x58] sm:$0xff]  ;;  %v126_v25 = vadd.s32 10, %v46_v18  ;;  %v223_v26 = vadd.s32 22, %v47_v24  ;;  %v49_v27 = vld [vmem:[%s1579_s1 + $0x40] sm:$0xff]  ;;  %v222_v29 = vadd.s32 22, %v46_v18 }
  0x12   :  { %1136 = vset.pattern.permute.xlu0 %v1187_v13  ;;  %v225_v28 = vadd.s32 22, %v49_v27  ;;  %v51_v30 = vld [vmem:[%s1579_s1 + $0x50] sm:$0xff]  ;;  %v53_v32 = vld [vmem:[%s1579_s1 + $0x60] sm:$0xff]  ;;  %v127_v34 = vadd.s32 10, %v47_v24  ;;  %v128_v35 = vadd.s32 10, %v48_v20  ;;  %v54_v36 = vld [vmem:[%s1579_s1 + $0x68] sm:$0xff] }
  0x13   :  { %58 = vperm.xlu0 %1136, %v41_v1   ;;  %1131 = vset.pattern.permute.xlu1 %v1187_v13  ;;  %v227_v31 = vadd.s32 22, %v51_v30  ;;  %v229_v33 = vadd.s32 22, %v53_v32  ;;  %v56_v37 = vld [vmem:[%s1579_s1 + $0x78] sm:$0xff]  ;;  %v224_v38 = vadd.s32 22, %v48_v20  ;;  %v55_v39 = vld [vmem:[%s1579_s1 + $0x70] sm:$0xff]  ;;  %v129_v41 = vadd.s32 10, %v49_v27 }
  0x14   :  { %64 = vperm.xlu1 %1131, %v43_v2   ;;  %v231_v40 = vadd.s32 22, %v55_v39  ;;  %v130_v42 = vadd.s32 10, %v50_v21  ;;  %v226_v43 = vadd.s32 22, %v50_v21  ;;  %v131_v44 = vadd.s32 10, %v51_v30 }
  0x15   :  { %v132_v45 = vadd.s32 10, %v52_v23  ;;  %v228_v46 = vadd.s32 22, %v52_v23  ;;  %v133_v47 = vadd.s32 10, %v53_v32  ;;  %v134_v48 = vadd.s32 10, %v54_v36 }
  0x16   :  { %v230_v49 = vadd.s32 22, %v54_v36  ;;  %v135_v52 = vadd.s32 10, %v55_v39  ;;  %v136_v56 = vadd.s32 10, %v56_v37  ;;  %v1328_v59 = vand.u32 127, %v39_v55 }
  0x17   :  { %61 = vperm.xlu0 %1136, %v42_v3   ;;  %v232_v60 = vadd.s32 22, %v56_v37  ;;  %vm349_vm7 = vcmask 228352   ;;  %v1158_v3 = vld [vmem:[%s1581_s3] sm:$0xff]  }
  0x18   :  { %1132 = vset.pattern.permute.xlu1 %v1186_v5  ;;  %vm1342_vm11 = vmpackc.low %vm349_vm7, %vm349_vm7 }
  0x19   :  { %144 = vperm.xlu1 %1132, %v123_v14  }
  0x1b   :  { %67 = vperm.xlu0 %1136, %v44_v15  }
  0x1d   :  { %147 = vperm.xlu1 %1132, %v124_v17  }
  0x1f   :  { %73 = vperm.xlu0 %1136, %v46_v18  }
  0x21   :  { %1133 = vset.pattern.permute.xlu1 %v1185_v4 }
  0x22   :  { %243 = vperm.xlu1 %1133, %v220_v19  }
  0x23   :  { %79 = vperm.xlu0 %1136, %v48_v20  }
  0x26   :  { %1134 = vset.pattern.permute.xlu1 %v1187_v13 }
  0x27   :  { %70 = vperm.xlu1 %1134, %v45_v10   ;;  %85 = vperm.xlu0 %1136, %v50_v21  }
  0x2b   :  { %1135 = vset.pattern.permute.xlu1 %v1186_v5  ;;  %91 = vperm.xlu0 %1136, %v52_v23  }
  0x2c   :  { %150 = vperm.xlu1 %1135, %v125_v22  }
  0x2f   :  { %1145 = vset.pattern.permute.xlu0 %v1185_v4 }
  0x30   :  { %153 = vperm.xlu1 %1135, %v126_v25   ;;  %252 = vperm.xlu0 %1145, %v223_v26  }
  0x34   :  { %1137 = vset.pattern.permute.xlu1 %v1185_v4  ;;  %258 = vperm.xlu0 %1145, %v225_v28  }
  0x35   :  { %249 = vperm.xlu1 %1137, %v222_v29  }
  0x38   :  { %264 = vperm.xlu0 %1145, %v227_v31  }
  0x39   :  { %1138 = vset.pattern.permute.xlu1 %v1187_v13 }
  0x3a   :  { %76 = vperm.xlu1 %1138, %v47_v24  }
  0x3c   :  { %270 = vperm.xlu0 %1145, %v229_v33  }
  0x3e   :  { %1139 = vset.pattern.permute.xlu1 %v1186_v5 }
  0x3f   :  { %156 = vperm.xlu1 %1139, %v127_v34  }
  0x40   :  { %1150 = vset.pattern.permute.xlu0 %v1187_v13 }
  0x41   :  { %97 = vperm.xlu0 %1150, %v54_v36  }
  0x43   :  { %159 = vperm.xlu1 %1139, %v128_v35  }
  0x45   :  { %103 = vperm.xlu0 %1150, %v56_v37  }
  0x47   :  { %1140 = vset.pattern.permute.xlu1 %v1185_v4 }
  0x48   :  { %255 = vperm.xlu1 %1140, %v224_v38  }
  0x49   :  { %1154 = vset.pattern.permute.xlu0 %v1185_v4 }
  0x4a   :  { %276 = vperm.xlu0 %1154, %v231_v40  }
  0x4c   :  { %1141 = vset.pattern.permute.xlu1 %v1187_v13 }
  0x4d   :  { %82 = vperm.xlu1 %1141, %v49_v27  }
  0x4e   :  { %1157 = vset.pattern.permute.xlu0 %v1187_v13 }
  0x51   :  { %1142 = vset.pattern.permute.xlu1 %v1186_v5 }
  0x52   :  { %162 = vperm.xlu1 %1142, %v129_v41  }
  0x56   :  { %165 = vperm.xlu1 %1142, %v130_v42  }
  0x5a   :  { %1143 = vset.pattern.permute.xlu1 %v1185_v4 }
  0x5b   :  { %261 = vperm.xlu1 %1143, %v226_v43  }
  0x5f   :  { %1144 = vset.pattern.permute.xlu1 %v1187_v13 }
  0x60   :  { %88 = vperm.xlu1 %1144, %v51_v30  }
  0x64   :  { %1146 = vset.pattern.permute.xlu1 %v1186_v5 }
  0x65   :  { %168 = vperm.xlu1 %1146, %v131_v44  }
  0x69   :  { %171 = vperm.xlu1 %1146, %v132_v45  }
  0x6d   :  { %1147 = vset.pattern.permute.xlu1 %v1185_v4 }
  0x6e   :  { %267 = vperm.xlu1 %1147, %v228_v46  }
  0x72   :  { %1148 = vset.pattern.permute.xlu1 %v1187_v13 }
  0x73   :  { %94 = vperm.xlu1 %1148, %v53_v32  }
  0x77   :  { %1149 = vset.pattern.permute.xlu1 %v1186_v5 }
  0x78   :  { %174 = vperm.xlu1 %1149, %v133_v47  }
  0x7c   :  { %177 = vperm.xlu1 %1149, %v134_v48  }
  0x80   :  { %1151 = vset.pattern.permute.xlu1 %v1185_v4 }
  0x81   :  { %273 = vperm.xlu1 %1151, %v230_v49  }
  0x85   :  { %1152 = vset.pattern.permute.xlu1 %v1187_v13  ;;  %v139_v50 = vpop.permute.xlu1 %138  ;;  %v235_v51 = vpop.permute.xlu0 %234 }
  0x86   :  { %100 = vperm.xlu1 %1152, %v55_v39   ;;  %vm185_vm0 = vcmp.eq.s32.totalorder %v1328_v59, %v139_v50  ;;  %vm281_vm2 = vcmp.eq.s32.totalorder %v1328_v59, %v235_v51 }
  0x89   :  { %v142_v53 = vpop.permute.xlu1 %141  ;;  %v241_v54 = vpop.permute.xlu0 %240 }
  0x8a   :  { %1153 = vset.pattern.permute.xlu1 %v1186_v5  ;;  %vm186_vm4 = vcmp.eq.s32.totalorder %v1328_v59, %v142_v53  ;;  %vm283_vm14 = vcmp.eq.s32.totalorder %v1328_v59, %v241_v54 }
  0x8b   :  { %180 = vperm.xlu1 %1153, %v135_v52  }
  0x8d   :  { %v247_v57 = vpop.permute.xlu0 %246 }
  0x8e   :  { %v238_v58 = vpop.permute.xlu1 %237 }
  0x8f   :  { %183 = vperm.xlu1 %1153, %v136_v56   ;;  %vm282_vm8 = vcmp.eq.s32.totalorder %v1328_v59, %v238_v58 }
  0x92   :  { %v59_v61 = vpop.permute.xlu0 %58 }
  0x93   :  { %vm105_vm1 = vcmp.eq.s32.totalorder %v1328_v59, %v59_v61  ;;  %1155 = vset.pattern.permute.xlu1 %v1185_v4  ;;  %v65_v62 = vpop.permute.xlu1 %64  ;;  %v345_v4 = vld [vmem:[%s1580_s2] sm:$0xff] }
  0x94   :  { %vm201_vm3 = vmor %vm105_vm1, %vm185_vm0  ;;  %279 = vperm.xlu1 %1155, %v232_v60   ;;  %984 = vmatprep.mubr.msk.f32.mxu0 %vm349_vm7, %v345_v4  ;;  %vm107_vm13 = vcmp.eq.s32.totalorder %v1328_v59, %v65_v62 }
  0x95   :  { %vm297_vm5 = vmor %vm201_vm3, %vm281_vm2 }
  0x96   :  { %v62_v63 = vpop.permute.xlu0 %61  ;;  %v849_v1 = vsel %vm297_vm5, 1.0, %v1188_v16 }
  0x97   :  { %vm106_vm6 = vcmp.eq.s32.totalorder %v1328_v59, %v62_v63 }
  0x98   :  { %vm202_vm9 = vmor %vm106_vm6, %vm186_vm4  ;;  %v145_v0 = vpop.permute.xlu1 %144  ;;  %1156 = vset.pattern.permute.xlu1 %v1187_v13 }
  0x99   :  { %vm298_vm10 = vmor %vm202_vm9, %vm282_vm8  ;;  %vm187_vm12 = vcmp.eq.s32.totalorder %v1328_v59, %v145_v0  ;;  %vm285_vm9 = vcmp.eq.s32.totalorder %v1328_v59, %v247_v57 }
  0x9a   :  { %v850_v2 = vsel %vm298_vm10, 1.0, %v1188_v16  ;;  %v68_v6 = vpop.permute.xlu0 %67  ;;  %vm203_vm15 = vmor %vm107_vm13, %vm187_vm12 }
  0x9b   :  { %v1041_v5 = vpack.c.bf16 %v850_v2, %v849_v1  ;;  %vm108_vm0 = vcmp.eq.s32.totalorder %v1328_v59, %v68_v6  ;;  %vm299_vm2 = vmor %vm203_vm15, %vm283_vm14  ;;  %v348_v6 = vld [vmem:[%s1580_s2 + $0x18] sm:$0xff] }
  0x9c   :  { %v148_v7 = vpop.permute.xlu1 %147  ;;  %v851_v9 = vsel %vm299_vm2, 1.0, %v1188_v16 }
  0x9d   :  { %1043 = vmatprep.subr.msk.bf16.mxu0 %vm1342_vm11, %v1041_v5  ;;  %vm188_vm1 = vcmp.eq.s32.totalorder %v1328_v59, %v148_v7  ;;  %v501_v7 = vld [vmem:[%s1582_s4] sm:$0xff] }
  0x9e   :  { %1046 = vmatpush3.bf16.xpose.msk.msra.mxu0 %vm1342_vm11, %v1041_v5  ;;  %vm204_vm3 = vmor %vm108_vm0, %vm188_vm1  ;;  %v74_v13 = vpop.permute.xlu0 %73  ;;  %v346_v5 = vld [vmem:[%s1580_s2 + $0x8] sm:$0xff]  ;;  %507 = vperm.xlu1 %1156, %v501_v7  }
  0x9f   :  { %vm110_vm12 = vcmp.eq.s32.totalorder %v1328_v59, %v74_v13  ;;  %v600_v13 = vld [vmem:[%s1584_s6 + $0x8] sm:$0xff] }
  0xa1   :  { %v244_v8 = vpop.permute.xlu1 %243 }
  0xa2   :  { %vm284_vm4 = vcmp.eq.s32.totalorder %v1328_v59, %v244_v8  ;;  %v80_v17 = vpop.permute.xlu0 %79  ;;  %v502_v8 = vld [vmem:[%s1582_s4 + $0x8] sm:$0xff] }
  0xa3   :  { %vm300_vm5 = vmor %vm204_vm3, %vm284_vm4  ;;  %512 = vperm.xlu0 %1157, %v502_v8  }
  0xa4   :  { %v852_v10 = vsel %vm300_vm5, 1.0, %v1188_v16 }
  0xa5   :  { %v1047_v11 = vpack.c.bf16 %v852_v10, %v851_v9  ;;  %v503_v9 = vld [vmem:[%s1582_s4 + $0x10] sm:$0xff]  ;;  %v599_v10 = vld [vmem:[%s1584_s6] sm:$0xff] }
  0xa6   :  { %v71_v12 = vpop.permute.xlu1 %70  ;;  %v86_v19 = vpop.permute.xlu0 %85  ;;  %517 = vperm.xlu1 %1156, %v503_v9  }
  0xa7   :  { %1049 = vmatprep.subr.msk.bf16.mxu0 %vm1342_vm11, %v1047_v11  ;;  %vm109_vm8 = vcmp.eq.s32.totalorder %v1328_v59, %v71_v12  ;;  %603 = vperm.xlu0 %1157, %v599_v10   ;;  %v801_v12 = vld [vmem:[%s1586_s8] sm:$0xff] }
  0xa8   :  { %1052 = vmatpush3.bf16.xpose.msk.msra.mxu0 %vm1342_vm11, %v1047_v11  ;;  %v504_v11 = vld [vmem:[%s1582_s4 + $0x18] sm:$0xff] }
  0xaa   :  { %v92_v24 = vpop.permute.xlu0 %91  ;;  %522 = vperm.xlu1 %1156, %v504_v11  }
  0xab   :  { %v151_v14 = vpop.permute.xlu1 %150  ;;  %805 = vperm.xlu0 %1157, %v801_v12  }
  0xac   :  { %vm189_vm6 = vcmp.eq.s32.totalorder %v1328_v59, %v151_v14  ;;  %v823_v14 = vld [vmem:[#allocation2] sm:$0x1] }
  0xad   :  { %vm205_vm10 = vmor %vm109_vm8, %vm189_vm6  ;;  %vm112_vm6 = vcmp.eq.s32.totalorder %v1328_v59, %v80_v17 }
  0xae   :  { %vm301_vm14 = vmor %vm205_vm10, %vm285_vm9  ;;  %608 = vperm.xlu1 %1156, %v600_v13  }
  0xaf   :  { %v154_v15 = vpop.permute.xlu1 %153  ;;  %v853_v20 = vsel %vm301_vm14, 1.0, %v1188_v16  ;;  %v253_v26 = vpop.permute.xlu0 %252  ;;  %826 = vperm.xlu0 %1157, %v823_v14  }
  0xb0   :  { %vm190_vm13 = vcmp.eq.s32.totalorder %v1328_v59, %v154_v15  ;;  %vm287_vm5 = vcmp.eq.s32.totalorder %v1328_v59, %v253_v26  ;;  %v802_v15 = vld [vmem:[%s1586_s8 + $0x8] sm:$0xff] }
  0xb1   :  { %vm206_vm15 = vmor %vm110_vm12, %vm190_vm13 }
  0xb2   :  { %810 = vperm.xlu1 %1156, %v802_v15  }
  0xb3   :  { %v259_v34 = vpop.permute.xlu0 %258 }
  0xb4   :  { %v250_v18 = vpop.permute.xlu1 %249 }
  0xb5   :  { %vm286_vm0 = vcmp.eq.s32.totalorder %v1328_v59, %v250_v18 }
  0xb6   :  { %vm302_vm1 = vmor %vm206_vm15, %vm286_vm0 }
  0xb7   :  { %v854_v21 = vsel %vm302_vm1, 1.0, %v1188_v16  ;;  %vm289_vm1 = vcmp.eq.s32.totalorder %v1328_v59, %v259_v34  ;;  %v265_v42 = vpop.permute.xlu0 %264 }
  0xb8   :  { %v1053_v22 = vpack.c.bf16 %v854_v21, %v853_v20 }
  0xb9   :  { %v77_v23 = vpop.permute.xlu1 %76 }
  0xba   :  { %1055 = vmatprep.subr.msk.bf16.mxu0 %vm1342_vm11, %v1053_v22  ;;  %vm111_vm3 = vcmp.eq.s32.totalorder %v1328_v59, %v77_v23  ;;  %v1159_v23 = vld [vmem:[%s1581_s3 + $0x8] sm:$0xff]  }
  0xbb   :  { %1058 = vmatpush3.bf16.xpose.msk.msra.mxu0 %vm1342_vm11, %v1053_v22  ;;  %v271_v49 = vpop.permute.xlu0 %270 }
  0xbe   :  { %v157_v25 = vpop.permute.xlu1 %156 }
  0xbf   :  { %vm191_vm2 = vcmp.eq.s32.totalorder %v1328_v59, %v157_v25 }
  0xc0   :  { %vm207_vm4 = vmor %vm111_vm3, %vm191_vm2  ;;  %vm114_vm2 = vcmp.eq.s32.totalorder %v1328_v59, %v86_v19  ;;  %v98_v51 = vpop.permute.xlu0 %97 }
  0xc1   :  { %vm303_vm9 = vmor %vm207_vm4, %vm287_vm5 }
  0xc2   :  { %v160_v27 = vpop.permute.xlu1 %159  ;;  %v855_v29 = vsel %vm303_vm9, 1.0, %v1188_v16 }
  0xc3   :  { %vm192_vm8 = vcmp.eq.s32.totalorder %v1328_v59, %v160_v27 }
  0xc4   :  { %vm208_vm10 = vmor %vm112_vm6, %vm192_vm8  ;;  %v104_v60 = vpop.permute.xlu0 %103 }
  0xc7   :  { %v256_v28 = vpop.permute.xlu1 %255 }
  0xc8   :  { %vm288_vm12 = vcmp.eq.s32.totalorder %v1328_v59, %v256_v28 }
  0xc9   :  { %vm304_vm13 = vmor %vm208_vm10, %vm288_vm12  ;;  %v277_v62 = vpop.permute.xlu0 %276 }
  0xca   :  { %v856_v30 = vsel %vm304_vm13, 1.0, %v1188_v16  ;;  %vm291_vm13 = vcmp.eq.s32.totalorder %v1328_v59, %v265_v42  ;;  %v1160_v42 = vld [vmem:[%s1583_s5] sm:$0xff]  }
  0xcb   :  { %v1059_v31 = vpack.c.bf16 %v856_v30, %v855_v29 }
  0xcc   :  { %v83_v32 = vpop.permute.xlu1 %82 }
  0xcd   :  { %1061 = vmatprep.subr.msk.bf16.mxu0 %vm1342_vm11, %v1059_v31  ;;  %vm113_vm15 = vcmp.eq.s32.totalorder %v1328_v59, %v83_v32 }
  0xce   :  { %1064 = vmatpush3.bf16.xpose.msk.msra.mxu0 %vm1342_vm11, %v1059_v31 }
  0xd1   :  { %v163_v33 = vpop.permute.xlu1 %162 }
  0xd2   :  { %vm193_vm14 = vcmp.eq.s32.totalorder %v1328_v59, %v163_v33 }
  0xd3   :  { %vm209_vm0 = vmor %vm113_vm15, %vm193_vm14  ;;  %vm116_vm15 = vcmp.eq.s32.totalorder %v1328_v59, %v92_v24 }
  0xd4   :  { %vm305_vm4 = vmor %vm209_vm0, %vm289_vm1 }
  0xd5   :  { %v166_v35 = vpop.permute.xlu1 %165  ;;  %v857_v37 = vsel %vm305_vm4, 1.0, %v1188_v16 }
  0xd6   :  { %vm194_vm3 = vcmp.eq.s32.totalorder %v1328_v59, %v166_v35 }
  0xd7   :  { %vm210_vm5 = vmor %vm114_vm2, %vm194_vm3 }
  0xda   :  { %v262_v36 = vpop.permute.xlu1 %261 }
  0xdb   :  { %vm290_vm6 = vcmp.eq.s32.totalorder %v1328_v59, %v262_v36 }
  0xdc   :  { %vm306_vm8 = vmor %vm210_vm5, %vm290_vm6 }
  0xdd   :  { %v858_v38 = vsel %vm306_vm8, 1.0, %v1188_v16  ;;  %vm118_vm8 = vcmp.eq.s32.totalorder %v1328_v59, %v98_v51  ;;  %v668_v51 = vld [vmem:[%s1578_s0 + $0x28] sm:$0xff] }
  0xde   :  { %v1065_v39 = vpack.c.bf16 %v858_v38, %v857_v37 }
  0xdf   :  { %v89_v40 = vpop.permute.xlu1 %88 }
  0xe0   :  { %1067 = vmatprep.subr.msk.bf16.mxu0 %vm1342_vm11, %v1065_v39  ;;  %vm115_vm10 = vcmp.eq.s32.totalorder %v1328_v59, %v89_v40 }
  0xe1   :  { %1070 = vmatpush3.bf16.xpose.msk.msra.mxu0 %vm1342_vm11, %v1065_v39 }
  0xe4   :  { %v169_v41 = vpop.permute.xlu1 %168 }
  0xe5   :  { %vm195_vm9 = vcmp.eq.s32.totalorder %v1328_v59, %v169_v41 }
  0xe6   :  { %vm211_vm12 = vmor %vm115_vm10, %vm195_vm9  ;;  %vm293_vm10 = vcmp.eq.s32.totalorder %v1328_v59, %v271_v49  ;;  %v666_v49 = vld [vmem:[%s1578_s0 + $0x18] sm:$0xff] }
  0xe7   :  { %vm307_vm0 = vmor %vm211_vm12, %vm291_vm13 }
  0xe8   :  { %v172_v43 = vpop.permute.xlu1 %171  ;;  %v859_v45 = vsel %vm307_vm0, 1.0, %v1188_v16 }
  0xe9   :  { %vm196_vm14 = vcmp.eq.s32.totalorder %v1328_v59, %v172_v43  ;;  %v1190_v43 = vmov 0.0|0.0  }
  0xea   :  { %vm212_vm1 = vmor %vm116_vm15, %vm196_vm14 }
  0xed   :  { %v268_v44 = vpop.permute.xlu1 %267 }
  0xee   :  { %vm292_vm2 = vcmp.eq.s32.totalorder %v1328_v59, %v268_v44  ;;  %v663_v44 = vld [vmem:[%s1578_s0] sm:$0xff] }
  0xef   :  { %vm308_vm3 = vmor %vm212_vm1, %vm292_vm2 }
  0xf0   :  { %v860_v46 = vsel %vm308_vm3, 1.0, %v1188_v16  ;;  %vm295_vm3 = vcmp.eq.s32.totalorder %v1328_v59, %v277_v62  ;;  %v674_v62 = vld [vmem:[%s1578_s0 + $0x58] sm:$0xff] }
  0xf1   :  { %v1071_v47 = vpack.c.bf16 %v860_v46, %v859_v45  ;;  %v664_v45 = vld [vmem:[%s1578_s0 + $0x8] sm:$0xff] }
  0xf2   :  { %v95_v48 = vpop.permute.xlu1 %94  ;;  %v1090_v46 = vpack.c.bf16 %v664_v45, %v663_v44 }
  0xf3   :  { %1073 = vmatprep.subr.msk.bf16.mxu0 %vm1342_vm11, %v1071_v47  ;;  %vm117_vm5 = vcmp.eq.s32.totalorder %v1328_v59, %v95_v48  ;;  %v665_v48 = vld [vmem:[%s1578_s0 + $0x10] sm:$0xff] }
  0xf4   :  { %1076 = vmatpush3.bf16.xpose.msk.msra.mxu0 %vm1342_vm11, %v1071_v47 }
  0xf7   :  { %v175_v50 = vpop.permute.xlu1 %174 }
  0xf8   :  { %vm197_vm4 = vcmp.eq.s32.totalorder %v1328_v59, %v175_v50  ;;  %v667_v50 = vld [vmem:[%s1578_s0 + $0x20] sm:$0xff] }
  0xf9   :  { %vm213_vm6 = vmor %vm117_vm5, %vm197_vm4  ;;  %vm120_vm5 = vcmp.eq.s32.totalorder %v1328_v59, %v104_v60 }
  0xfa   :  { %vm309_vm12 = vmor %vm213_vm6, %vm293_vm10 }
  0xfb   :  { %v178_v52 = vpop.permute.xlu1 %177  ;;  %v861_v54 = vsel %vm309_vm12, 1.0, %v1188_v16  ;;  %vm679_vm12 = vcmask 130048  }
  0xfc   :  { %vm198_vm9 = vcmp.eq.s32.totalorder %v1328_v59, %v178_v52  ;;  %v1098_v52 = vpack.c.bf16 %v668_v51, %v667_v50 }
  0xfd   :  { %vm214_vm13 = vmor %vm118_vm8, %vm198_vm9 }
 0x100   :  { %v274_v53 = vpop.permute.xlu1 %273 }
 0x101   :  { %vm294_vm14 = vcmp.eq.s32.totalorder %v1328_v59, %v274_v53  ;;  %v669_v53 = vld [vmem:[%s1578_s0 + $0x30] sm:$0xff] }
 0x102   :  { %vm310_vm15 = vmor %vm214_vm13, %vm294_vm14 }
 0x103   :  { %v862_v56 = vsel %vm310_vm15, 1.0, %v1188_v16  ;;  %vm1499_vm13 = vmpackc.low %vm679_vm12, %vm679_vm12 }
 0x104   :  { %v1077_v57 = vpack.c.bf16 %v862_v56, %v861_v54  ;;  %v670_v54 = vld [vmem:[%s1578_s0 + $0x38] sm:$0xff] }
 0x105   :  { %v101_v58 = vpop.permute.xlu1 %100  ;;  %v1102_v56 = vpack.c.bf16 %v670_v54, %v669_v53 }
 0x106   :  { %1079 = vmatprep.subr.msk.bf16.mxu0 %vm1342_vm11, %v1077_v57  ;;  %vm119_vm1 = vcmp.eq.s32.totalorder %v1328_v59, %v101_v58  ;;  %v672_v58 = vld [vmem:[%s1578_s0 + $0x48] sm:$0xff] }
 0x107   :  { %1082 = vmatpush3.bf16.xpose.msk.msra.mxu0 %vm1342_vm11, %v1077_v57  ;;  %v671_v57 = vld [vmem:[%s1578_s0 + $0x40] sm:$0xff] }
 0x108   :  { %v1106_v60 = vpack.c.bf16 %v672_v58, %v671_v57 }
 0x10a   :  { %v181_v61 = vpop.permute.xlu1 %180 }
 0x10b   :  { %vm199_vm0 = vcmp.eq.s32.totalorder %v1328_v59, %v181_v61  ;;  %v673_v61 = vld [vmem:[%s1578_s0 + $0x50] sm:$0xff] }
 0x10c   :  { %vm215_vm2 = vmor %vm119_vm1, %vm199_vm0 }
 0x10d   :  { %vm311_vm6 = vmor %vm215_vm2, %vm295_vm3 }
 0x10e   :  { %v184_v63 = vpop.permute.xlu1 %183  ;;  %v863_v1 = vsel %vm311_vm6, 1.0, %v1188_v16 }
 0x10f   :  { %vm200_vm4 = vcmp.eq.s32.totalorder %v1328_v59, %v184_v63  ;;  %v1110_v63 = vpack.c.bf16 %v674_v62, %v673_v61 }
 0x110   :  { %vm216_vm8 = vmor %vm120_vm5, %vm200_vm4 }
 0x113   :  { %v280_v0 = vpop.permute.xlu1 %279 }
 0x114   :  { %vm296_vm9 = vcmp.eq.s32.totalorder %v1328_v59, %v280_v0  ;;  %v347_v59 = vld [vmem:[%s1580_s2 + $0x10] sm:$0xff]  ;;  %v675_v0 = vld [vmem:[%s1578_s0 + $0x60] sm:$0xff] }
 0x115   :  { %vm312_vm10 = vmor %vm216_vm8, %vm296_vm9 }
 0x116   :  { %v864_v2 = vsel %vm312_vm10, 1.0, %v1188_v16 }
 0x117   :  { %v1083_v4 = vpack.c.bf16 %v864_v2, %v863_v1  ;;  %v676_v1 = vld [vmem:[%s1578_s0 + $0x68] sm:$0xff] }
 0x118   :  { %v1114_v2 = vpack.c.bf16 %v676_v1, %v675_v0 }
 0x119   :  { %1085 = vmatprep.subr.msk.bf16.mxu0 %vm1342_vm11, %v1083_v4 }
 0x11a   :  { %1088 = vmatpush3.bf16.xpose.msk.msra.mxu0 %vm1342_vm11, %v1083_v4  ;;  %vm535_vm11 = vcmask 261120   ;;  %v677_v4 = vld [vmem:[%s1578_s0 + $0x70] sm:$0xff] }
 0x11d   :  { %v508_v24 = vpop.permute.xlu1 %507 }
 0x121   :  { %985 = vmatmul.mubr.msk.f32.vlgmr.msra.gmra.mrb[0].mxu0 %vm349_vm7, %v346_v5  ;;  %v678_v5 = vld [vmem:[%s1578_s0 + $0x78] sm:$0xff]  ;;  %s1191_s0 = smov [#allocation3]  }
 0x122   :  { %987 = vmatprep.mubr.msk.f32.mxu0 %vm349_vm7, %v347_v59  ;;  %v513_v32 = vpop.permute.xlu0 %512  ;;  %v1118_v59 = vpack.c.bf16 %v678_v5, %v677_v4 }
 0x125   :  { %988 = vmatmul.mubr.msk.f32.gmra.mrb[2].mxu0 %vm349_vm7, %v348_v6  ;;  %vm1189_vm7 = vmmov 0   ;;  %v518_v25 = vpop.permute.xlu1 %517  ;;  %v662_v6 = vld [vmem:[%s1585_s7] sm:$0xff]  ;;  %s841_s7 = sshll.u32 %s1191_s0, 4  ;;  %s842_s7 = int_to_ptr.vmem [resolvable:$true] %s841_s7 }
 0x126   :  { %994 = vmatprep.mubr.msk.bf16.mxu0 %vm535_vm11, %v1158_v3  ;;  %1002 = vmatprep.mubr.msk.bf16.mxu1 %vm1189_vm7, %v1188_v16  ;;  %v604_v3 = vpop.permute.xlu0 %603  ;;  %s1161_s12 = scalar_lea.vmem %s842_s7, 16  ;;  %s1165_s13 = scalar_lea.vmem %s842_s7, 32 }
 0x127   :  { %p1162_p0 = scmp.ne.s32.totalorder %s842_s7, %s1161_s12  ;;  %p1166_p1 = scmp.lt.s32.totalorder %s842_s7, %s842_s7 }
 0x128   :  { %p1167_p2 = scmp.lt.s32.totalorder %s1165_s13, %s1161_s12 }
 0x129   :  { %v523_v29 = vpop.permute.xlu1 %522 }
 0x12a   :  { %p1168_p3 = por %p1167_p2, %p1166_p1 }
 0x12c   :  { %p1169_p4 = pnand %p1168_p3, %p1162_p0 }
 0x12d   :  { %v609_v7 = vpop.permute.xlu1 %608 }
 0x1f4   :  { %v986_v17 = vpop.f32.mrb[0].mxu0 }
 0x1f5   :  { %v476_v18 = vpop.f32.mrb[1].mxu0 }
 0x1f6   :  { %v495_v19 = vpack.c.bf16 %v986_v17, %v476_v18  ;;  %v806_v17 = vpop.permute.xlu0 %805  ;;  %v811_v18 = vpop.permute.xlu1 %810 }
 0x1f8   :  { %v989_v20 = vpop.f32.mrb[2].mxu0  ;;  %990 = vmatprep.subr.bf16.mxu0 %v495_v19 }
 0x1f9   :  { %v486_v21 = vpop.f32.mrb[3].mxu0  ;;  %991 = vmatpush3.bf16.msra.mxu0 %v495_v19 }
 0x1fa   :  { %v496_v22 = vpack.c.bf16 %v989_v20, %v486_v21 }
 0x1fc   :  { %992 = vmatprep.subr.bf16.mxu0 %v496_v22 }
 0x1fd   :  { %993 = vmatpush3.bf16.msra.mxu0 %v496_v22 }
 0x200   :  { %995 = vmatmul.mubr.msk.bf16.vlgmr.msra.gmra.mrb[4].mxu0 %vm535_vm11, %v1159_v23 }
 0x2d3   :  { %v996_v26 = vpop.f32.mrb[4].mxu0 }
 0x2d4   :  { %v585_v27 = vadd.f32 %v996_v26, %v518_v25  ;;  %v576_v28 = vpop.f32.mrb[5].mxu0  ;;  %v830_v26 = vshrl.u32 %v39_v55, 7 }
 0x2d5   :  { %v577_v30 = vadd.f32 %v576_v28, %v508_v24  ;;  %v997_v31 = vpop.f32.mrb[6].mxu0 }
 0x2d6   :  { %v588_v33 = vadd.f32 %v997_v31, %v523_v29  ;;  %v579_v34 = vpop.f32.mrb[7].mxu0  ;;  %v593_v36 = vmax.f32 %v585_v27, 0.0  ;;  %v831_v28 = vsub.s32 0, %v830_v26  ;;  %v827_v29 = vpop.permute.xlu0 %826 }
 0x2d7   :  { %v580_v35 = vadd.f32 %v579_v34, %v513_v32  ;;  %v591_v38 = vmax.f32 %v577_v30, 0.0 }
 0x2d8   :  { %v594_v37 = vmax.f32 %v588_v33, 0.0  ;;  %v832_v32 = vrot.slane %v827_v29, %v831_v28 }
 0x2d9   :  { %v592_v39 = vmax.f32 %v580_v35, 0.0 }
 0x2da   :  { %v596_v40 = vpack.c.bf16 %v594_v37, %v593_v36 }
 0x2db   :  { %v595_v41 = vpack.c.bf16 %v592_v39, %v591_v38 }
 0x2dd   :  { %999 = vmatpush3.bf16.msra.mxu1 %v595_v41 }
 0x2de   :  { %1000 = vmatprep.subr.bf16.mxu1 %v1188_v16 }
 0x2e1   :  { %1001 = vmatpush3.bf16.msra.mxu1 %v596_v40 }
 0x2e2   :  { %1089 = vmatprep.subr.bf16.mxu1 %v1190_v43 }
 0x2e4   :  { %1003 = vmatmul.mubr.msk.bf16.vlgmr.msra.gmra.mrb[0].mxu1 %vm535_vm11, %v1160_v42 }
 0x2e5   :  { %1038 = vmatprep.mubr.msk.f32.mxu1 %vm1189_vm7, %v1188_v16  ;;  %v1094_v16 = vpack.c.bf16 %v666_v49, %v665_v48 }
 0x2ea   :  { %1092 = vmatpush3.bf16.xpose.msk.msra.mxu1 %vm1499_vm13, %v1090_v46 }
 0x2eb   :  { %1093 = vmatprep.subr.bf16.mxu1 %v1190_v43 }
 0x2f2   :  { %1096 = vmatpush3.bf16.xpose.msk.msra.mxu1 %vm1499_vm13, %v1094_v16 }
 0x2f3   :  { %1097 = vmatprep.subr.bf16.mxu1 %v1190_v43 }
 0x2fa   :  { %1100 = vmatpush3.bf16.xpose.msk.msra.mxu1 %vm1499_vm13, %v1098_v52 }
 0x2fb   :  { %1101 = vmatprep.subr.bf16.mxu1 %v1190_v43 }
 0x302   :  { %1104 = vmatpush3.bf16.xpose.msk.msra.mxu1 %vm1499_vm13, %v1102_v56 }
 0x303   :  { %1105 = vmatprep.subr.bf16.mxu1 %v1190_v43 }
 0x30a   :  { %1108 = vmatpush3.bf16.xpose.msk.msra.mxu1 %vm1499_vm13, %v1106_v60 }
 0x30b   :  { %1109 = vmatprep.subr.bf16.mxu1 %v1190_v43 }
 0x312   :  { %1112 = vmatpush3.bf16.xpose.msk.msra.mxu1 %vm1499_vm13, %v1110_v63 }
 0x313   :  { %1113 = vmatprep.subr.bf16.mxu1 %v1190_v43 }
 0x31a   :  { %1116 = vmatpush3.bf16.xpose.msk.msra.mxu1 %vm1499_vm13, %v1114_v2 }
 0x31b   :  { %1117 = vmatprep.subr.bf16.mxu1 %v1190_v43 }
 0x322   :  { %1120 = vmatpush3.bf16.xpose.msk.msra.mxu1 %vm1499_vm13, %v1118_v59 }
 0x329   :  { %1039 = vmatmul.mubr.msk.f32.vlgmr.msra.gmra.mrb[4].mxu1 %vm679_vm12, %v662_v6 }
 0x3b7   :  { %v653_v8 = vpop.f32.mrb[0].mxu1 }
 0x3b8   :  { %v654_v9 = vadd.f32 %v653_v8, %v604_v3  ;;  %v1004_v10 = vpop.f32.mrb[1].mxu1 }
 0x3b9   :  { %v656_v11 = vpop.f32.mrb[2].mxu1 }
 0x3ba   :  { %v660_v12 = vmax.f32 %v654_v9, 0.0  ;;  %v657_v13 = vadd.f32 %v656_v11, %v609_v7  ;;  %v1005_v14 = vpop.f32.mrb[3].mxu1 }
 0x3bc   :  { %v661_v15 = vmax.f32 %v657_v13, 0.0  ;;  %v813_v19 = vmul.f32 %v806_v17, %v660_v12 }
 0x3be   :  { %v814_v20 = vmul.f32 %v811_v18, %v661_v15 }
 0x3c0   :  { %v815_v21 = vadd.f32 %v814_v20, %v813_v19 }
 0x3c2   :  { %v816_v22 = vrot.slane %v815_v21, 4 }
 0x3c4   :  { %v817_v23 = vadd.f32 %v816_v22, %v815_v21 }
 0x3c6   :  { %v818_v24 = vrot.slane %v817_v23, 2 }
 0x3c8   :  { %v819_v25 = vadd.f32 %v818_v24, %v817_v23 }
 0x3ca   :  { %v820_v27 = vrot.slane %v819_v25, 1 }
 0x3cc   :  { %v821_v30 = vadd.f32 %v820_v27, %v819_v25 }
 0x3fc   :  { %v797_v31 = vpop.f32.mrb[4].mxu1 }
 0x3fd   :  { %v822_v33 = vadd.f32 %v821_v30, %v797_v31  ;;  %v1040_v34 = vpop.f32.mrb[5].mxu1 }
 0x3ff   :  { %v833_v35 = vadd.f32 %v832_v32, %v822_v33 }
 0x401   :  { %834 = vst [vmem:[#allocation3] sm:$0x1] %v833_v35 }
 0x402   :  { %1172 = shalt.err (!%p1169_p4)
}
 0x403   :  { %s1173_s16 = scalar_lea.hbm %s1588_s10, 16 }
 0x404   :  { %p1174_p5 = scmp.ne.s32.totalorder %s1588_s10, %s1173_s16  ;;  %p1177_p6 = scmp.lt.u32.totalorder %s1173_s16, %s1588_s10 }
 0x406   :  { %p1179_p7 = pnand %p1177_p6, %p1174_p5 }
 0x408   :  { %1182 = shalt.err (!%p1179_p7)
}
 0x409   :  { %844 = dma.vmem_to_hbm [thread:$0]  %s842_s7, 16, %s1588_s10, [#allocation4]  }
 0x40a   :  { %1183 = dma.done.wait [#allocation4], 16  }
 0x40b   :  { %1184 = vsyncadd [#allocation4], 4294967280 }
 0x40c   :  { %848 = vsyncpa [#allocation4], 1 }

</bundles_post_ra>
